<compile_context>
chip_gen: v5e
topology: v5e:2x2
jax: 0.10.0
libtpu: 0.0.40
codegen_flags: <defaults>
</compile_context>

<pallas_src>
import numpy as np

import jax
import jax.numpy as jnp
from jax.experimental import pallas as pl
from jax.experimental.pallas import tpu as pltpu


# ----------------------------- Pallas kernel --------------------------------
def _context_texture_kernel(up_ref, main_ref, w_up_ref, w_main_ref, a_t_ref,
                            b_ref, o_ref):
    """One batch element, fully fused.

    up_ref:    (1, C_up,   Hu*Wu)   flattened `up` plane
    main_ref:  (1, C_main, Hm*Wm)   flattened `main` plane
    w_up_ref:  (C_main, C_up)       1x1 conv weight for `up`
    w_main_ref:(C_main, C_main)     1x1 conv weight for `main`
    a_t_ref:   (Hu*Wu, Hm*Wm)       bilinear-2x-upsample (+crop) operator^T
    b_ref:     (C_main, 1)          fused bias (b_up + b_main)
    o_ref:     (1, C_main, Hm*Wm)
    """
    up = up_ref[0]        # (C_up, Hu*Wu)
    main = main_ref[0]    # (C_main, Hm*Wm)

    # 1x1 conv on `up`:   (C_main, C_up) @ (C_up, Hu*Wu) -> (C_main, Hu*Wu)
    u = jnp.dot(w_up_ref[...], up, preferred_element_type=jnp.float32)
    # bilinear 2x upsample + crop as one MXU matmul -> (C_main, Hm*Wm)
    u = jnp.dot(u, a_t_ref[...], preferred_element_type=jnp.float32)
    # 1x1 conv on `main`: (C_main, C_main) @ (C_main, Hm*Wm) -> (C_main, Hm*Wm)
    m = jnp.dot(w_main_ref[...], main, preferred_element_type=jnp.float32)

    o_ref[0] = (u + m + b_ref[...]).astype(o_ref.dtype)


# ------------------------- interpolation operator ---------------------------
def _bilinear_up2x_matrix(in_size, crop_size):
    """Rows 0..crop_size-1 of the PyTorch bilinear 2x upsample matrix.

    F.interpolate(scale_factor=2, mode='bilinear', align_corners=False):
      src = max((o + 0.5) * 0.5 - 0.5, 0);  i0 = floor(src); i1 = min(i0+1, n-1)
    """
    A = np.zeros((crop_size, in_size), np.float32)
    for o in range(crop_size):
        src = max((o + 0.5) * 0.5 - 0.5, 0.0)
        i0 = min(int(np.floor(src)), in_size - 1)
        i1 = min(i0 + 1, in_size - 1)
        w1 = src - i0
        A[o, i0] += 1.0 - w1
        A[o, i1] += w1
    return A


# ------------------------------- wrapper -------------------------------------
def context_texture_forward(up, main, params):
    """NCHW inputs, NCHW output — fused ContextTexture.forward."""
    N, C_up, Hu, Wu = up.shape
    Nm, C_main, Hm, Wm = main.shape
    assert N == Nm
    assert 2 * Hu >= Hm and 2 * Wu >= Wm, "upsampled `up` must cover `main`"

    # Row-major merge of (H, W) -> H*W is a free metadata reshape.
    up_flat = up.reshape(N, C_up, Hu * Wu)
    main_flat = main.reshape(N, C_main, Hm * Wm)

    # Upsample (+crop) operator, built once at trace time.
    a_h = _bilinear_up2x_matrix(Hu, Hm)                    # (Hm, Hu)
    a_w = _bilinear_up2x_matrix(Wu, Wm)                    # (Wm, Wu)
    a_t = jnp.asarray(np.kron(a_h, a_w).T)                 # (Hu*Wu, Hm*Wm)

    w_up = params["up_w"]                                  # (C_main, C_up)
    w_main = params["main_w"]                              # (C_main, C_main)
    # Bilinear weights sum to 1 per output pixel, so the up-conv bias commutes
    # with the upsample and can be fused with the main-conv bias.
    b = (params["up_b"] + params["main_b"]).reshape(C_main, 1)

    out = pl.pallas_call(
        _context_texture_kernel,
        out_shape=jax.ShapeDtypeStruct((N, C_main, Hm * Wm), main.dtype),
        grid=(N,),
        in_specs=[
            pl.BlockSpec((1, C_up, Hu * Wu), lambda n: (n, 0, 0)),
            pl.BlockSpec((1, C_main, Hm * Wm), lambda n: (n, 0, 0)),
            pl.BlockSpec((C_main, C_up), lambda n: (0, 0)),
            pl.BlockSpec((C_main, C_main), lambda n: (0, 0)),
            pl.BlockSpec((Hu * Wu, Hm * Wm), lambda n: (0, 0)),
            pl.BlockSpec((C_main, 1), lambda n: (0, 0)),
        ],
        out_specs=pl.BlockSpec((1, C_main, Hm * Wm), lambda n: (n, 0, 0)),
        compiler_params=pltpu.CompilerParams(
            dimension_semantics=("parallel",)),
    )(up_flat, main_flat, w_up, w_main, a_t, b)

    return out.reshape(N, C_main, Hm, Wm)


# ----------------------------- reference (pure JAX) --------------------------
def context_texture_ref(up, main, params):
    N, C_up, Hu, Wu = up.shape
    _, C_main, Hm, Wm = main.shape
    hp = jax.lax.Precision.HIGHEST
    up_c = (jnp.einsum("oi,nihw->nohw", params["up_w"], up, precision=hp)
            + params["up_b"][None, :, None, None])
    main_c = (jnp.einsum("oi,nihw->nohw", params["main_w"], main, precision=hp)
              + params["main_b"][None, :, None, None])
    res = jax.image.resize(up_c, (N, C_main, 2 * Hu, 2 * Wu), method="bilinear")
    res = res[:, :, :Hm, :Wm]
    return res + main_c


# ----------------------------- parameter init --------------------------------
def init_params(key, c_up, c_main):
    k1, k2, k3, k4 = jax.random.split(key, 4)
    s_up = 1.0 / np.sqrt(c_up)
    s_main = 1.0 / np.sqrt(c_main)
    return {
        "up_w": s_up * jax.random.normal(k1, (c_main, c_up), jnp.float32),
        "up_b": s_up * jax.random.normal(k2, (c_main,), jnp.float32),
        "main_w": s_main * jax.random.normal(k3, (c_main, c_main), jnp.float32),
        "main_b": s_main * jax.random.normal(k4, (c_main,), jnp.float32),
    }


if __name__ == "__main__":
    # Small shapes: batch=2, up: 16ch @ 8x8, main: 32ch @ 16x16 (exact 2x).
    N, C_up, Hu, Wu = 2, 16, 8, 8
    C_main, Hm, Wm = 32, 16, 16

    key = jax.random.PRNGKey(0)
    k_up, k_main, k_p = jax.random.split(key, 3)
    up = jax.random.normal(k_up, (N, C_up, Hu, Wu), jnp.float32)     # NCHW
    main = jax.random.normal(k_main, (N, C_main, Hm, Wm), jnp.float32)
    params = init_params(k_p, C_up, C_main)

    out = jax.block_until_ready(context_texture_forward(up, main, params))
    ref = jax.block_until_ready(context_texture_ref(up, main, params))

    assert out.shape == (N, C_main, Hm, Wm)
    np.testing.assert_allclose(np.asarray(out), np.asarray(ref),
                               rtol=1e-4, atol=1e-4)
    print("KERNEL_OK")
</pallas_src>

<mosaic_0001>
module attributes {stable_mosaic.version = 11 : i64} {
  func.func @_context_texture_kernel(%arg0: i32, %arg1: memref<1x16x64xf32, #tpu.memory_space<vmem>>, %arg2: memref<1x32x256xf32, #tpu.memory_space<vmem>>, %arg3: memref<32x16xf32, #tpu.memory_space<vmem>>, %arg4: memref<32x32xf32, #tpu.memory_space<vmem>>, %arg5: memref<64x256xf32, #tpu.memory_space<vmem>>, %arg6: memref<32x1xf32, #tpu.memory_space<vmem>>, %arg7: memref<1x32x256xf32, #tpu.memory_space<vmem>>) attributes {dimension_semantics = [#tpu.dimension_semantics<parallel>], iteration_bounds = array<i64: 2>, scalar_prefetch = 0 : i64, scratch_operands = 0 : i64, tpu.core_type = #tpu.core_type<tc>, window_params = [{transform_indices = @transform_0, window_bounds = array<i64: 1, 16, 64>}, {transform_indices = @transform_1, window_bounds = array<i64: 1, 32, 256>}, {pipeline_mode = #tpu.pipeline_mode<synchronous>, transform_indices = @transform_2, window_bounds = array<i64: 32, 16>}, {pipeline_mode = #tpu.pipeline_mode<synchronous>, transform_indices = @transform_3, window_bounds = array<i64: 32, 32>}, {pipeline_mode = #tpu.pipeline_mode<synchronous>, transform_indices = @transform_4, window_bounds = array<i64: 64, 256>}, {pipeline_mode = #tpu.pipeline_mode<synchronous>, transform_indices = @transform_5, window_bounds = array<i64: 32, 1>}, {transform_indices = @transform_6, window_bounds = array<i64: 1, 32, 256>}]} {
    %c0 = arith.constant 0 : index
    %c0_0 = arith.constant 0 : index
    %c0_1 = arith.constant 0 : index
    %0 = vector.load %arg1[%c0, %c0_0, %c0_1] : memref<1x16x64xf32, #tpu.memory_space<vmem>>, vector<1x16x64xf32>
    %1 = vector.shape_cast %0 : vector<1x16x64xf32> to vector<16x64xf32>
    %c0_2 = arith.constant 0 : index
    %c0_3 = arith.constant 0 : index
    %c0_4 = arith.constant 0 : index
    %2 = vector.load %arg2[%c0_2, %c0_3, %c0_4] : memref<1x32x256xf32, #tpu.memory_space<vmem>>, vector<1x32x256xf32>
    %3 = vector.shape_cast %2 : vector<1x32x256xf32> to vector<32x256xf32>
    %c0_5 = arith.constant 0 : index
    %c0_6 = arith.constant 0 : index
    %4 = vector.load %arg3[%c0_5, %c0_6] : memref<32x16xf32, #tpu.memory_space<vmem>>, vector<32x16xf32>
    %cst = arith.constant dense<0.000000e+00> : vector<32x64xf32>
    %5 = tpu.matmul %4, %1, %cst {dimension_numbers = #tpu.dot_dimension_numbers<[1], [0], [0], [1], [0, 0, 1, 1], [], []>} : vector<32x16xf32>, vector<16x64xf32>, vector<32x64xf32> -> vector<32x64xf32>
    %c0_7 = arith.constant 0 : index
    %c0_8 = arith.constant 0 : index
    %6 = vector.load %arg5[%c0_7, %c0_8] : memref<64x256xf32, #tpu.memory_space<vmem>>, vector<64x256xf32>
    %cst_9 = arith.constant dense<0.000000e+00> : vector<32x256xf32>
    %7 = tpu.matmul %5, %6, %cst_9 {dimension_numbers = #tpu.dot_dimension_numbers<[1], [0], [0], [1], [0, 0, 1, 1], [], []>} : vector<32x64xf32>, vector<64x256xf32>, vector<32x256xf32> -> vector<32x256xf32>
    %c0_10 = arith.constant 0 : index
    %c0_11 = arith.constant 0 : index
    %8 = vector.load %arg4[%c0_10, %c0_11] : memref<32x32xf32, #tpu.memory_space<vmem>>, vector<32x32xf32>
    %cst_12 = arith.constant dense<0.000000e+00> : vector<32x256xf32>
    %9 = tpu.matmul %8, %3, %cst_12 {dimension_numbers = #tpu.dot_dimension_numbers<[1], [0], [0], [1], [0, 0, 1, 1], [], []>} : vector<32x32xf32>, vector<32x256xf32>, vector<32x256xf32> -> vector<32x256xf32>
    %10 = arith.addf %7, %9 : vector<32x256xf32>
    %c0_13 = arith.constant 0 : index
    %c0_14 = arith.constant 0 : index
    %11 = vector.load %arg6[%c0_13, %c0_14] : memref<32x1xf32, #tpu.memory_space<vmem>>, vector<32x1xf32>
    %12 = vector.broadcast %11 : vector<32x1xf32> to vector<32x256xf32>
    %13 = arith.addf %10, %12 : vector<32x256xf32>
    %c0_15 = arith.constant 0 : index
    %c0_16 = arith.constant 0 : index
    %c0_17 = arith.constant 0 : index
    %14 = vector.load %arg7[%c0_15, %c0_16, %c0_17] : memref<1x32x256xf32, #tpu.memory_space<vmem>>, vector<1x32x256xf32>
    %15 = vector.shape_cast %14 : vector<1x32x256xf32> to vector<32x256xf32>
    %16 = vector.shape_cast %13 : vector<32x256xf32> to vector<1x32x256xf32>
    tpu.vector_store %arg7[%c0_15, %c0_16, %c0_17], %16 {strides = array<i32>} : memref<1x32x256xf32, #tpu.memory_space<vmem>>, vector<1x32x256xf32>,
    return
  }
  func.func @transform_0(%arg0: i32) -> (i32, i32, i32) {
    %c0_i32 = arith.constant 0 : i32
    %c0_i32_0 = arith.constant 0 : i32
    %c0_i32_1 = arith.constant 0 : i32
    return %arg0, %c0_i32, %c0_i32_0 : i32, i32, i32
  }
  func.func @transform_1(%arg0: i32) -> (i32, i32, i32) {
    %c0_i32 = arith.constant 0 : i32
    %c0_i32_0 = arith.constant 0 : i32
    %c0_i32_1 = arith.constant 0 : i32
    return %arg0, %c0_i32, %c0_i32_0 : i32, i32, i32
  }
  func.func @transform_2(%arg0: i32) -> (i32, i32) {
    %c0_i32 = arith.constant 0 : i32
    %c0_i32_0 = arith.constant 0 : i32
    %c0_i32_1 = arith.constant 0 : i32
    return %c0_i32, %c0_i32_0 : i32, i32
  }
  func.func @transform_3(%arg0: i32) -> (i32, i32) {
    %c0_i32 = arith.constant 0 : i32
    %c0_i32_0 = arith.constant 0 : i32
    %c0_i32_1 = arith.constant 0 : i32
    return %c0_i32, %c0_i32_0 : i32, i32
  }
  func.func @transform_4(%arg0: i32) -> (i32, i32) {
    %c0_i32 = arith.constant 0 : i32
    %c0_i32_0 = arith.constant 0 : i32
    %c0_i32_1 = arith.constant 0 : i32
    return %c0_i32, %c0_i32_0 : i32, i32
  }
  func.func @transform_5(%arg0: i32) -> (i32, i32) {
    %c0_i32 = arith.constant 0 : i32
    %c0_i32_0 = arith.constant 0 : i32
    %c0_i32_1 = arith.constant 0 : i32
    return %c0_i32, %c0_i32_0 : i32, i32
  }
  func.func @transform_6(%arg0: i32) -> (i32, i32, i32) {
    %c0_i32 = arith.constant 0 : i32
    %c0_i32_0 = arith.constant 0 : i32
    %c0_i32_1 = arith.constant 0 : i32
    return %arg0, %c0_i32, %c0_i32_0 : i32, i32, i32
  }
}

</mosaic_0001>

<bundles_post_ra>
// kernel: tpu_custom_call.1
= control target key start
LH: loop header
LB: loop body
LE: loop exit
PB: predicated region body
PF: predicated region fallthrough
CT: control target
= control target key end

     0   :  { %11 = vsyncpa [#allocation3], 0  ;;  %s1180_s0 = inlined_call_operand.vmem [shape: f32[2,16,64], index: 0, kind: input, shape index: {}]   ;;  %s1181_s1 = inlined_call_operand.hbm [shape: f32[2,32,256], index: 1, kind: input, shape index: {}]   ;;  %s1182_s2 = inlined_call_operand.vmem [shape: f32[32,16], index: 2, kind: input, shape index: {}]   ;;  %s1183_s3 = inlined_call_operand.vmem [shape: f32[32,32], index: 3, kind: input, shape index: {}]   ;;  %s1184_s4 = inlined_call_operand.hbm [shape: f32[64,256], index: 4, kind: input, shape index: {}]   ;;  %s1185_s5 = inlined_call_operand.vmem [shape: f32[32,1], index: 5, kind: input, shape index: {}]   ;;  %s1186_s6 = inlined_call_operand.hbm [shape: f32[2,32,256], index: 6, kind: output, shape index: {}]  }
   0x1   :  { %13 = vsyncpa [#allocation3 + $0x1], 0 }
   0x2   :  { %14 = vsyncpa [#allocation6], 0 }
   0x3   :  { %15 = vsyncpa [#allocation4], 0 }
   0x4   :  { %17 = vsyncpa [#allocation4 + $0x1], 0  ;;  %s958_s21 = smov 0   ;;  %s960_s22 = smov 0  }
   0x5   :  { %s962_s23 = smov 0   ;;  %s964_s24 = smov 0  }
   0x6 LB: > { %s979_s25 = sadd.s32 4294967295, %s915_s24   ;;  %s678_s26 = sadd.s32 4294967294, %s915_s24   ;;  %s915_s24 = sphi %s964_s24, %s1200_s24   ;;  %s911_s23 = sphi %s962_s23, %s1199_s23   ;;  %s907_s22 = sphi %s960_s22, %s1198_s22   ;;  %s903_s21 = sphi %s958_s21, %s1197_s21  }
   0x7   : > { %p69_p0 = scmp.ne.s32.totalorder %s907_s22, %s903_s21  ;;  %p70_p1 = scmp.eq.s32.totalorder %s979_s25, 0 }
   0x8   : > { %p177_p2 = scmp.eq.s32.totalorder %s979_s25, 1  ;;  %p183_p3 = scmp.eq.s32.totalorder %s678_s26, 1 }
   0x9   : > { %p988_p4 = por %p70_p1, %p69_p0  ;;  %p679_p5 = scmp.ge.s32.totalorder %s915_s24, 1 }
   0xa   : > { %p993_p6 = por %p183_p3, %p69_p0  ;;  %p190_p7 = scmp.lt.s32.totalorder %s915_s24, 3 }
   0xb   : > { %s207_s7 = sshll.u32 %s1184_s4, 4  ;;  %s917_s9 = smov [#allocation5]   ;;  %s208_s7 = int_to_ptr.hbm [resolvable:$true] %s207_s7 }
   0xc   : > { %p1001_p8 = pnand %p679_p5, %p190_p7  ;;  %s209_s10 = sshll.u32 %s917_s9, 4  ;;  %s210_s10 = int_to_ptr.vmem [resolvable:$true] %s209_s10 }
   0xd   : > { %s1011_s11 = sadd.s32 1, %s915_s24   ;;  %s1187_s12 = smov 256  }
   0xe   : > { %p729_p9 = pneg %p1001_p8  ;;  %s1188_s13 = smov 16  }
   0xf   : > { %s53_s14 = ssub.s32 %s915_s24, %s1011_s11  ;;  %s56_s15 = sadd.s32 1, %s911_s23 }
  0x10   : > { %p730_p10 = pnand %p729_p9, %p70_p1  ;;  %p54_p12 = scmp.eq.s32.totalorder %s53_s14, 0 }
  0x11   : > { %p63_p13 = scmp.ne.s32.totalorder %s911_s23, %s907_s22  ;;  %p64_p0 = scmp.eq.s32.totalorder %s915_s24, 0 }
  0x12   : > { %732 = dma.hbm_to_vmem [thread:$0]  (!%p730_p10), %s208_s7, 2048, %s210_s10, [#allocation6], %s1187_s12, %s1187_s12, %s1188_s13  }
  0x13   : > { %s1023_s16 = scalar_select %p54_p12, %s911_s23, %s56_s15  }
  0x14   : > { %p1027_p3 = por %p177_p2, %p63_p13  ;;  %p742_p5 = scmp.lt.s32.totalorder %s915_s24, 2 }
  0x15   : > { %s234_s18 = sand.u32 1, %s911_s23   ;;  %s716_s19 = sshll.u32 %s915_s24, 6 }
  0x16   : > { %p65_p7 = por %p64_p0, %p63_p13  ;;  %s682_s20 = sshll.u32 %s234_s18, 6 }
  0x17   : > { %s243_s30 = scalar_lea.hbm %s1181_s1, %s716_s19  ;;  %s238_s9 = scalar_lea.vmem [#allocation2], %s682_s20 }
  0x18   : > { %s244_s7 = sshll.u32 %s243_s30, 4  ;;  %s246_s10 = sshll.u32 %s238_s9, 4  ;;  %s245_s7 = int_to_ptr.hbm [resolvable:$true] %s244_s7  ;;  %s247_s10 = int_to_ptr.vmem [resolvable:$true] %s246_s10 }
  0x19   : > { %p1037_p9 = pnand %p742_p5, %p65_p7  ;;  %s235_s15 = scalar_lea.sflag [#allocation3], %s234_s18 }
  0x1a   : > { %s815_s12 = sshra.s32 %s245_s7, 4  ;;  %s822_s20 = scalar_lea.hbm %s1181_s1, 128  ;;  %s816_s12 = int_to_ptr.hbm [resolvable:$true] %s815_s12 }
  0x1b   : > { %s817_s13 = scalar_lea.hbm %s816_s12, 64  ;;  %p819_p10 = pneg %p1037_p9 }
  0x1c   : > { %p818_p2 = scmp.ne.s32.totalorder %s816_s12, %s817_s13  ;;  %p823_p0 = scmp.lt.s32.totalorder %s816_s12, %s1181_s1 }
  0x1d   : > { %p824_p5 = scmp.lt.s32.totalorder %s822_s20, %s817_s13 }
  0x1e   : > { %p820_p12 = pnand %p819_p10, %p818_p2 }
  0x1f   : > { %p825_p7 = por %p824_p5, %p823_p0 }
  0x20   : > { %p821_p13 = pneg %p820_p12 }
  0x22   : > { %p826_p11 = pnand %p825_p7, %p821_p13 }
  0x24   : > { %829 = shalt.err (!%p826_p11)
}
  0x25   : > { %s1194_s18 = smov 16   ;;  %s1195_s9 = smov 256  }
  0x26   : > { %736 = dma.hbm_to_vmem [thread:$0]  (!%p1037_p9), %s245_s7, 1024, %s247_s10, %s235_s15, %s1195_s9, %s1195_s9, %s1194_s18  }
  0x27   : > { %258 = sbr.rel (%p1001_p8) target bundleno = 347 (0x15b), region = 44  ;;  %s1057_s19 = sand.u32 (!%p1001_p8), 1, %s907_s22  }
  0x28   : > { %s686_s12 = sshll.u32 (!%p1001_p8), %s1057_s19, 6  ;;  %s261_s13 = scalar_lea.sflag (!%p1001_p8), [#allocation3], %s1057_s19 }
  0x29   : > { %s1063_s26 = scalar_lea.vmem (!%p1001_p8), [#allocation2], %s686_s12 }
  0x2c   : > { %890 = dma.done.wait (%p988_p4), %s261_s13, 1024  }
  0x2d   : > { %892 = vsyncadd (%p988_p4), %s261_s13, 4294966272 }
  0x2e   : > { %894 = dma.done.wait (%p70_p1), [#allocation6], 2048  }
  0x2f   : > { %896 = vsyncadd (%p70_p1), [#allocation6], 4294965248  ;;  %p304_p8 = scmp.lt.s32.totalorder %s979_s25, 1  ;;  %v319_v2 = vld [vmem:[%s1182_s2] sm:$0xff]  ;;  %vm323_vm0 = vcmask 130048   ;;  %v321_v3 = vld [vmem:[%s1182_s2 + $0x10] sm:$0xff] }
  0x30   : > { %v379_v4 = vld [vmem:[#allocation5 + $0x70] sm:$0xff]  ;;  %v380_v5 = vld [vmem:[#allocation5 + $0x78] sm:$0xff]  ;;  %v377_v7 = vld [vmem:[#allocation5 + $0x60] sm:$0xff]  ;;  %vm385_vm1 = vcmask 261120   ;;  %v920_v34 = vmov 0   ;;  %vm456_vm2 = vcmask 523264  }
  0x31   : > { %s305_s8 = scalar_select %p304_p8, %s979_s25, 1  ;;  %v318_v6 = vld [vmem:[%s1063_s26 + $0x38] sm:$0xff]  ;;  %v378_v8 = vld [vmem:[#allocation5 + $0x68] sm:$0xff]  ;;  %v317_v9 = vld [vmem:[%s1063_s26 + $0x30] sm:$0xff]  ;;  %477 = vmatpush.msra.mxu3 %v379_v4  ;;  %783 = vset.pattern.permute.xlu0 %v920_v34 }
  0x32   : > { %v316_v10 = vld [vmem:[%s1063_s26 + $0x28] sm:$0xff]  ;;  %439 = vmatpush.msra.mxu2 %v318_v6  ;;  %v375_v11 = vld [vmem:[#allocation5 + $0x50] sm:$0xff]  ;;  %v376_v12 = vld [vmem:[#allocation5 + $0x58] sm:$0xff]  ;;  %784 = vset.pattern.permute.xlu1 %v920_v34 }
  0x33   : > { %s717_s7 = sshll.u32 %s305_s8, 4  ;;  %478 = vmatpush.msra.mxu3 %v377_v7  ;;  %v314_v13 = vld [vmem:[%s1063_s26 + $0x18] sm:$0xff]  ;;  %v315_v14 = vld [vmem:[%s1063_s26 + $0x20] sm:$0xff]  ;;  %v374_v16 = vld [vmem:[#allocation5 + $0x48] sm:$0xff] }
  0x34   : > { %s308_s15 = scalar_lea.vmem %s1180_s0, %s717_s7  ;;  %440 = vmatpush.msra.mxu2 %v316_v10  ;;  %v373_v15 = vld [vmem:[#allocation5 + $0x40] sm:$0xff]  ;;  %v320_v17 = vld [vmem:[%s1182_s2 + $0x8] sm:$0xff]  ;;  %v322_v18 = vld [vmem:[%s1182_s2 + $0x18] sm:$0xff]  ;;  %s865_s7 = scalar_lea.hbm %s1186_s6, 128 }
  0x35   : > { %v310_v0 = vld [vmem:[%s308_s15 + $0x8] sm:$0xff]  ;;  %v309_v1 = vld [vmem:[%s308_s15] sm:$0xff]  ;;  %479 = vmatpush.msra.mxu3 %v375_v11  ;;  %v313_v19 = vld [vmem:[%s1063_s26 + $0x10] sm:$0xff]  ;;  %s1136_s15 = scalar_lea.vmem [#allocation7], %s686_s12  ;;  %s718_s12 = sshll.u32 %s979_s25, 6 }
  0x36   : > { %350 = vmatpush.msra.mxu0 %v310_v0  ;;  %719 = vmatpush.msra.mxu1 %v310_v0  ;;  %v312_v20 = vld [vmem:[%s1063_s26 + $0x8] sm:$0xff]  ;;  %v371_v21 = vld [vmem:[#allocation5 + $0x30] sm:$0xff]  ;;  %v372_v22 = vld [vmem:[#allocation5 + $0x38] sm:$0xff]  ;;  %s579_s29 = scalar_lea.hbm %s1186_s6, %s718_s12  ;;  %s580_s30 = sshll.u32 %s1136_s15, 4  ;;  %s581_s30 = int_to_ptr.vmem [resolvable:$true] %s580_s30 }
  0x37   : > { %441 = vmatpush.msra.mxu2 %v314_v13  ;;  %480 = vmatpush.msra.mxu3 %v373_v15  ;;  %v381_v23 = vld [vmem:[%s1183_s3] sm:$0xff]  ;;  %v370_v25 = vld [vmem:[#allocation5 + $0x28] sm:$0xff]  ;;  %v367_v26 = vld [vmem:[#allocation5 + $0x10] sm:$0xff]  ;;  %s568_s25 = scalar_lea.sflag [#allocation4], %s1057_s19 }
  0x38   : > { %351 = vmatpush.msra.mxu0 %v309_v1  ;;  %720 = vmatpush.msra.mxu1 %v309_v1  ;;  %v369_v24 = vld [vmem:[#allocation5 + $0x20] sm:$0xff]  ;;  %v368_v27 = vld [vmem:[#allocation5 + $0x18] sm:$0xff]  ;;  %v366_v29 = vld [vmem:[#allocation5 + $0x8] sm:$0xff] }
  0x39   : > { %691 = vmatmul.msk.f32.vlgmr.msra.gmra.mxu0 %vm323_vm0, %v319_v2  ;;  %693 = vmatmul.msk.f32.vlgmr.msra.gmra.mxu1 %vm323_vm0, %v321_v3  ;;  %v365_v28 = vld [vmem:[#allocation5] sm:$0xff]  ;;  %v382_v31 = vld [vmem:[%s1183_s3 + $0x8] sm:$0xff]  ;;  %v383_v32 = vld [vmem:[%s1183_s3 + $0x10] sm:$0xff] }
  0x3a   : > { %506 = vmatpush.msrb.mxu0 %v380_v5  ;;  %410 = vmatpush.msrb.mxu1 %v317_v9  ;;  %v311_v30 = vld [vmem:[%s1063_s26] sm:$0xff]  ;;  %v384_v35 = vld [vmem:[%s1183_s3 + $0x18] sm:$0xff]  ;;  %v528_v36 = vld [vmem:[%s1185_s5 + $0x8] sm:$0xff]  ;;  %s582_s26 = sshll.u32 %s579_s29, 4  ;;  %s583_s26 = int_to_ptr.hbm [resolvable:$true] %s582_s26 }
  0x3b   : > { %442 = vmatpush.msra.mxu2 %v312_v20  ;;  %481 = vmatpush.msra.mxu3 %v371_v21  ;;  %v527_v33 = vld [vmem:[%s1185_s5] sm:$0xff]  ;;  %v529_v37 = vld [vmem:[%s1185_s5 + $0x10] sm:$0xff]  ;;  %v530_v38 = vld [vmem:[%s1185_s5 + $0x18] sm:$0xff]  ;;  %s859_s18 = sshra.s32 %s583_s26, 4  ;;  %s860_s18 = int_to_ptr.hbm [resolvable:$true] %s859_s18 }
  0x3c   : > { %507 = vmatpush.msrb.mxu0 %v378_v8  ;;  %411 = vmatpush.msrb.mxu1 %v315_v14  ;;  %s861_s9 = scalar_lea.hbm %s860_s18, 64  ;;  %p866_p9 = scmp.lt.s32.totalorder %s860_s18, %s1186_s6 }
  0x3d   : > { %699 = vmatmul.msk.f32.vlgmr.msra.gmra.mxu2 %vm385_vm1, %v381_v23  ;;  %482 = vmatpush.msra.mxu3 %v369_v24  ;;  %p862_p1 = scmp.ne.s32.totalorder %s860_s18, %s861_s9  ;;  %p867_p2 = scmp.lt.s32.totalorder %s865_s7, %s861_s9 }
  0x3e   : > { %508 = vmatpush.msrb.mxu0 %v376_v12  ;;  %412 = vmatpush.msrb.mxu1 %v313_v19 }
  0x3f   : > { %483 = vmatpush.msra.mxu3 %v367_v26  ;;  %533 = vperm.xlu0 %783, %v527_v33   ;;  %p863_p4 = pnand %p862_p1, %p1027_p3  ;;  %p868_p10 = por %p867_p2, %p866_p9 }
  0x40   : > { %509 = vmatpush.msrb.mxu0 %v374_v16  ;;  %413 = vmatpush.msrb.mxu1 %v311_v30 }
  0x41   : > { %692 = vmatmul.msk.f32.gmra.mxu0 %vm323_vm0, %v320_v17  ;;  %694 = vmatmul.msk.f32.gmra.mxu1 %vm323_vm0, %v322_v18  ;;  %p864_p11 = pneg %p863_p4 }
  0x42   : > { %510 = vmatpush.msrb.mxu0 %v372_v22  ;;  %484 = vmatpush.msra.mxu3 %v365_v28 }
  0x43   : > { %543 = vperm.xlu1 %784, %v529_v37   ;;  %p869_p12 = pnand %p868_p10, %p864_p11 }
  0x44   : > { %511 = vmatpush.msrb.mxu0 %v370_v25 }
  0x45   : > { %700 = vmatmul.msk.f32.gmra.mxu2 %vm385_vm1, %v382_v31 }
  0x46   : > { %512 = vmatpush.msrb.mxu0 %v368_v27 }
  0x47   : > { %538 = vperm.xlu0 %783, %v528_v36  }
  0x48   : > { %513 = vmatpush.msrb.mxu0 %v366_v29 }
  0x49   : > { %695 = vmatmul.msk.f32.vlgmr.msrb.gmra.mxu1 %vm385_vm1, %v381_v23 }
  0x4b   : > { %548 = vperm.xlu1 %784, %v530_v38  }
  0x4d   : > { %701 = vmatmul.msk.f32.gmra.mxu2 %vm385_vm1, %v383_v32 }
  0x51   : > { %696 = vmatmul.msk.f32.gmra.mxu1 %vm385_vm1, %v382_v31 }
  0x55   : > { %702 = vmatmul.msk.f32.gmra.mxu2 %vm385_vm1, %v384_v35 }
  0x59   : > { %697 = vmatmul.msk.f32.gmra.mxu1 %vm385_vm1, %v383_v32 }
  0x61   : > { %698 = vmatmul.msk.f32.gmra.mxu1 %vm385_vm1, %v384_v35 }
  0xb1   : > { %v534_v44 = vpop.permute.xlu0 %533 }
  0xb5   : > { %v544_v61 = vpop.permute.xlu1 %543 }
  0xb6   : > { %v353_v39 = vpop.f32.mrf.mxu0  ;;  %v359_v41 = vpop.f32.mrf.mxu1 }
  0xb7   : > { %703 = vmatmul.msk.f32.vlgmr.msra.gmra.mxu3 %vm456_vm2, %v353_v39  ;;  %707 = vmatmul.msk.f32.vlgmr.msrb.gmra.mxu0 %vm456_vm2, %v353_v39 }
  0xb9   : > { %v539_v52 = vpop.permute.xlu0 %538 }
  0xbd   : > { %v549_v9 = vpop.permute.xlu1 %548 }
  0xbe   : > { %v356_v40 = vpop.f32.mrf.mxu0  ;;  %v362_v42 = vpop.f32.mrf.mxu1 }
  0xbf   : > { %704 = vmatmul.msk.f32.gmra.mxu3 %vm456_vm2, %v356_v40  ;;  %708 = vmatmul.msk.f32.gmra.mxu0 %vm456_vm2, %v356_v40 }
  0xc0   : > { %v444_v43 = vpop.f32.mrf.mxu2 }
  0xc6   : > { %v415_v45 = vpop.f32.mrf.mxu1 }
  0xc7   : > { %705 = vmatmul.msk.f32.gmra.mxu3 %vm456_vm2, %v359_v41  ;;  %709 = vmatmul.msk.f32.gmra.mxu0 %vm456_vm2, %v359_v41 }
  0xc8   : > { %v447_v48 = vpop.f32.mrf.mxu2 }
  0xce   : > { %v418_v54 = vpop.f32.mrf.mxu1 }
  0xcf   : > { %706 = vmatmul.msk.f32.gmra.mxu3 %vm456_vm2, %v362_v42  ;;  %710 = vmatmul.msk.f32.gmra.mxu0 %vm456_vm2, %v362_v42 }
  0xd0   : > { %v450_v58 = vpop.f32.mrf.mxu2 }
  0xd6   : > { %v421_v1 = vpop.f32.mrf.mxu1 }
  0xd8   : > { %v453_v4 = vpop.f32.mrf.mxu2 }
  0xde   : > { %v424_v11 = vpop.f32.mrf.mxu1 }
 0x134   : > { %v515_v46 = vpop.f32.mrf.mxu0 }
 0x135   : > { %v516_v47 = vadd.f32 %v515_v46, %v444_v43 }
 0x137   : > { %v552_v49 = vadd.f32 %v534_v44, %v516_v47 }
 0x139   : > { %560 = vst [vmem:[%s1136_s15 + $0x8] sm:$0xff] %v552_v49 }
 0x13a   : > { %v486_v50 = vpop.f32.mrf.mxu3 }
 0x13b   : > { %v487_v51 = vadd.f32 %v486_v50, %v415_v45 }
 0x13c   : > { %v518_v53 = vpop.f32.mrf.mxu0 }
 0x13d   : > { %v551_v55 = vadd.f32 %v534_v44, %v487_v51  ;;  %v519_v56 = vadd.f32 %v518_v53, %v447_v48 }
 0x13f   : > { %559 = vst [vmem:[%s1136_s15] sm:$0xff] %v551_v55  ;;  %v554_v57 = vadd.f32 %v539_v52, %v519_v56 }
 0x141   : > { %562 = vst [vmem:[%s1136_s15 + $0x18] sm:$0xff] %v554_v57 }
 0x142   : > { %v489_v59 = vpop.f32.mrf.mxu3 }
 0x143   : > { %v490_v60 = vadd.f32 %v489_v59, %v418_v54 }
 0x144   : > { %v521_v62 = vpop.f32.mrf.mxu0 }
 0x145   : > { %v553_v63 = vadd.f32 %v539_v52, %v490_v60  ;;  %v522_v0 = vadd.f32 %v521_v62, %v450_v58 }
 0x147   : > { %561 = vst [vmem:[%s1136_s15 + $0x10] sm:$0xff] %v553_v63  ;;  %v556_v2 = vadd.f32 %v544_v61, %v522_v0 }
 0x149   : > { %564 = vst [vmem:[%s1136_s15 + $0x28] sm:$0xff] %v556_v2 }
 0x14a   : > { %v492_v3 = vpop.f32.mrf.mxu3 }
 0x14b   : > { %v493_v5 = vadd.f32 %v492_v3, %v421_v1 }
 0x14c   : > { %v524_v6 = vpop.f32.mrf.mxu0 }
 0x14d   : > { %v555_v7 = vadd.f32 %v544_v61, %v493_v5  ;;  %v525_v8 = vadd.f32 %v524_v6, %v453_v4 }
 0x14f   : > { %563 = vst [vmem:[%s1136_s15 + $0x20] sm:$0xff] %v555_v7  ;;  %v558_v10 = vadd.f32 %v549_v9, %v525_v8 }
 0x151   : > { %566 = vst [vmem:[%s1136_s15 + $0x38] sm:$0xff] %v558_v10 }
 0x152   : > { %v495_v12 = vpop.f32.mrf.mxu3 }
 0x153   : > { %v496_v13 = vadd.f32 %v495_v12, %v424_v11 }
 0x155   : > { %v557_v14 = vadd.f32 %v549_v9, %v496_v13 }
 0x157   : > { %565 = vst [vmem:[%s1136_s15 + $0x30] sm:$0xff] %v557_v14 }
 0x158   : > { %872 = shalt.err (!%p869_p12)
}
 0x159   : > { %s921_s19 = smov 256   ;;  %s922_s15 = smov 16  }
 0x15a   : > { %727 = dma.vmem_to_hbm [thread:$0]  (%p1027_p3), %s581_s30, 1024, %s583_s26, %s568_s25, %s921_s19, %s921_s19, %s922_s15  }
 0x15b PF: > { %s597_s12 = sand.u32 1, %s903_s21   ;;  %p1196_p13 = scmp.ge.s32.totalorder %s915_s24, 2 }
 0x15c   : > { %s598_s27 = scalar_lea.sflag [#allocation4], %s597_s12 }
 0x15d   : > { %p738_p0 = pnand %p1196_p13, %p993_p6 }
 0x15f   : > { %p739_p5 = pneg %p738_p0 }
 0x161   : > { %898 = dma.done.wait (%p739_p5), %s598_s27, 1024  }
 0x162   : > { %900 = vsyncadd (%p739_p5), %s598_s27, 4294966272  ;;  %p20_p7 = scmp.ge.s32.totalorder %s1011_s11, 4   ;;  %s1197_s21 = smov %s907_s22 }
 0x163   : > { %s1198_s22 = smov %s911_s23  ;;  %s1199_s23 = smov %s1023_s16 }
 0x164   : > { %s1200_s24 = smov %s1011_s11  ;;  %22 = sbr.rel (!%p20_p7) target bundleno = 6 (0x6), region = 96 }
 0x169   :  { %604 = vsyncpa [#allocation3], 1 }
 0x16a   :  { %606 = vsyncpa [#allocation3 + $0x1], 1 }
 0x16b   :  { %607 = vsyncpa [#allocation6], 1 }
 0x16c   :  { %608 = vsyncpa [#allocation4], 1 }
 0x16d   :  { %610 = vsyncpa [#allocation4 + $0x1], 1 }

</bundles_post_ra>
